<compile_context>
chip_gen: v5e
topology: v5e:2x2
jax: 0.10.0
libtpu: 0.0.40
codegen_flags: <defaults>
</compile_context>

<pallas_src>
import jax
import jax.numpy as jnp
from jax.experimental import pallas as pl
from jax.experimental.pallas import tpu as pltpu


_MAX_TILE_BYTES = 4 * 1024 * 1024  # target bytes per (double-buffered) in/out buffer


def _normalize_kernel(mean_ref, inv_std_ref, x_ref, o_ref):
    # mean_ref / inv_std_ref: (tile_r, 1) f32 VMEM (per-row params, lane-broadcast)
    # x_ref / o_ref:          (tile_r, tile_l) VMEM
    x = x_ref[...].astype(jnp.float32)
    o_ref[...] = ((x - mean_ref[...]) * inv_std_ref[...]).astype(o_ref.dtype)


def _choose_tiles(nc, l, itemsize):
    """Pick (tile_r, tile_l) for an (nc, l) array so one tile is ~_MAX_TILE_BYTES.

    Blocks satisfy the TPU (8, 128) tiling rule: each block dim is either a
    multiple of (8 / 128) or equal to the full array dim.
    """
    budget = max(1024, _MAX_TILE_BYTES // itemsize)  # elements per buffer
    if nc * l <= budget:
        return nc, l  # whole array in a single lane-dense block

    rows_target = min(nc, 8)
    if l * rows_target <= budget:
        tile_l = l  # full rows fit comfortably; keep the lane dim un-split
    else:
        tile_l = max(128, ((budget // rows_target) // 128) * 128)

    rows = max(1, budget // tile_l)
    if rows >= nc or nc <= 8:
        tile_r = nc
    else:
        tile_r = min(nc, max(8, (rows // 8) * 8))
    return tile_r, tile_l


def augnet_forward(x, norm_mean, norm_std):
    """Pallas implementation of AugNet.forward (Kornia Normalize).

    Args:
      x: (N, C, H, W) input (NCHW, as in PyTorch), float32 or bfloat16.
      norm_mean: (C,) learnable per-channel mean.
      norm_std:  (C,) learnable per-channel std.
    Returns:
      (N, C, H, W) normalized output, same dtype as x.
    """
    N, C, H, W = x.shape
    nc, l = N * C, H * W

    # Lane-dense 2D view (free reshape for contiguous NCHW).
    x2 = x.reshape(nc, l)

    # Per-row parameters: row r = n*C + c  ->  channel c = r % C.
    mean_rows = jnp.tile(norm_mean.astype(jnp.float32), N).reshape(nc, 1)
    inv_std_rows = jnp.tile(1.0 / norm_std.astype(jnp.float32), N).reshape(nc, 1)

    tile_r, tile_l = _choose_tiles(nc, l, x.dtype.itemsize)
    grid = (pl.cdiv(nc, tile_r), pl.cdiv(l, tile_l))

    out2 = pl.pallas_call(
        _normalize_kernel,
        out_shape=jax.ShapeDtypeStruct((nc, l), x.dtype),
        grid_spec=pltpu.PrefetchScalarGridSpec(
            num_scalar_prefetch=0,
            grid=grid,
            in_specs=[
                pl.BlockSpec((tile_r, 1), lambda i, j: (i, 0)),       # mean rows
                pl.BlockSpec((tile_r, 1), lambda i, j: (i, 0)),       # 1/std rows
                pl.BlockSpec((tile_r, tile_l), lambda i, j: (i, j)),  # x
            ],
            out_specs=pl.BlockSpec((tile_r, tile_l), lambda i, j: (i, j)),
        ),
        compiler_params=pltpu.CompilerParams(
            dimension_semantics=("parallel", "parallel"),
            vmem_limit_bytes=48 * 1024 * 1024,
        ),
    )(mean_rows, inv_std_rows, x2)

    return out2.reshape(N, C, H, W)


if __name__ == "__main__":
    key = jax.random.PRNGKey(0)

    # Small NCHW shape consistent with the module (norm params are 3-vectors).
    N, C, H, W = 2, 3, 16, 16
    x = jax.random.uniform(key, (N, C, H, W), dtype=jnp.float32)

    # Parameter init exactly as in AugNet.__init__: mean = zeros(3), std = ones(3).
    norm_mean = jnp.zeros((C,), dtype=jnp.float32)
    norm_std = jnp.ones((C,), dtype=jnp.float32)

    out = augnet_forward(x, norm_mean, norm_std)
    out = jax.block_until_ready(out)

    ref = (x - norm_mean[None, :, None, None]) / norm_std[None, :, None, None]
    assert out.shape == x.shape
    assert jnp.allclose(out, ref, atol=1e-6), "mismatch vs reference (init params)"

    # Extra deterministic check with non-trivial learnable params so the per-channel
    # math (and multi-channel tiling) is actually exercised.
    mean2 = jnp.array([0.485, 0.456, 0.406], dtype=jnp.float32)
    std2 = jnp.array([0.229, 0.224, 0.225], dtype=jnp.float32)
    out2 = jax.block_until_ready(augnet_forward(x, mean2, std2))
    ref2 = (x - mean2[None, :, None, None]) / std2[None, :, None, None]
    assert jnp.allclose(out2, ref2, atol=1e-5, rtol=1e-5), "mismatch vs reference"

    print("KERNEL_OK")
</pallas_src>

<mosaic_0001>
module attributes {stable_mosaic.version = 11 : i64} {
  func.func @_normalize_kernel(%arg0: i32, %arg1: i32, %arg2: memref<6x1xf32, #tpu.memory_space<vmem>>, %arg3: memref<6x1xf32, #tpu.memory_space<vmem>>, %arg4: memref<6x256xf32, #tpu.memory_space<vmem>>, %arg5: memref<6x256xf32, #tpu.memory_space<vmem>>) attributes {dimension_semantics = [#tpu.dimension_semantics<parallel>, #tpu.dimension_semantics<parallel>], iteration_bounds = array<i64: 1, 1>, scalar_prefetch = 0 : i64, scratch_operands = 0 : i64, tpu.core_type = #tpu.core_type<tc>, window_params = [{transform_indices = @transform_0, window_bounds = array<i64: 6, 1>}, {transform_indices = @transform_1, window_bounds = array<i64: 6, 1>}, {transform_indices = @transform_2, window_bounds = array<i64: 6, 256>}, {transform_indices = @transform_3, window_bounds = array<i64: 6, 256>}]} {
    %c0 = arith.constant 0 : index
    %c0_0 = arith.constant 0 : index
    %0 = vector.load %arg4[%c0, %c0_0] : memref<6x256xf32, #tpu.memory_space<vmem>>, vector<6x256xf32>
    %c0_1 = arith.constant 0 : index
    %c0_2 = arith.constant 0 : index
    %1 = vector.load %arg2[%c0_1, %c0_2] : memref<6x1xf32, #tpu.memory_space<vmem>>, vector<6x1xf32>
    %2 = vector.broadcast %1 : vector<6x1xf32> to vector<6x256xf32>
    %3 = arith.subf %0, %2 : vector<6x256xf32>
    %c0_3 = arith.constant 0 : index
    %c0_4 = arith.constant 0 : index
    %4 = vector.load %arg3[%c0_3, %c0_4] : memref<6x1xf32, #tpu.memory_space<vmem>>, vector<6x1xf32>
    %5 = vector.broadcast %4 : vector<6x1xf32> to vector<6x256xf32>
    %6 = arith.mulf %3, %5 : vector<6x256xf32>
    %c0_5 = arith.constant 0 : index
    %c0_6 = arith.constant 0 : index
    %7 = vector.load %arg5[%c0_5, %c0_6] : memref<6x256xf32, #tpu.memory_space<vmem>>, vector<6x256xf32>
    tpu.vector_store %arg5[%c0_5, %c0_6], %6 {strides = array<i32>} : memref<6x256xf32, #tpu.memory_space<vmem>>, vector<6x256xf32>,
    return
  }
  func.func @transform_0(%arg0: i32, %arg1: i32) -> (i32, i32) {
    %c0_i32 = arith.constant 0 : i32
    %c0_i32_0 = arith.constant 0 : i32
    return %arg0, %c0_i32 : i32, i32
  }
  func.func @transform_1(%arg0: i32, %arg1: i32) -> (i32, i32) {
    %c0_i32 = arith.constant 0 : i32
    %c0_i32_0 = arith.constant 0 : i32
    return %arg0, %c0_i32 : i32, i32
  }
  func.func @transform_2(%arg0: i32, %arg1: i32) -> (i32, i32) {
    %c0_i32 = arith.constant 0 : i32
    return %arg0, %arg1 : i32, i32
  }
  func.func @transform_3(%arg0: i32, %arg1: i32) -> (i32, i32) {
    %c0_i32 = arith.constant 0 : i32
    return %arg0, %arg1 : i32, i32
  }
}

</mosaic_0001>

<bundles_post_ra>
// kernel: tpu_custom_call.1
= control target key start
LH: loop header
LB: loop body
LE: loop exit
PB: predicated region body
PF: predicated region fallthrough
CT: control target
= control target key end

     0   :  { %v80_v1 = vmov 0   ;;  %s117_s0 = inlined_call_operand.vmem [shape: f32[6,1], index: 0, kind: input, shape index: {}]   ;;  %s118_s1 = inlined_call_operand.vmem [shape: f32[6,1], index: 1, kind: input, shape index: {}]   ;;  %s119_s2 = inlined_call_operand.vmem [shape: f32[6,256], index: 2, kind: input, shape index: {}]   ;;  %s120_s3 = inlined_call_operand.hbm [shape: f32[6,256], index: 3, kind: output, shape index: {}]  }
   0x1   :  { %v17_v0 = vld [vmem:[%s117_s0] sm:$0x3f]  ;;  %53 = vset.pattern.permute.xlu0 %v80_v1 }
   0x2   :  { %8 = vsyncpa [#allocation3], 0  ;;  %20 = vperm.xlu0 %53, %v17_v0   ;;  %v25_v2 = vld [vmem:[%s118_s1] sm:$0x3f]  ;;  %v16_v5 = vld [vmem:[%s119_s2 + $0x8] sm:$0x3f] }
   0x3   :  { %v15_v4 = vld [vmem:[%s119_s2] sm:$0x3f]  ;;  %s81_s0 = smov [#allocation2]   ;;  %s42_s23 = sshll.u32 %s120_s3, 4  ;;  %s43_s23 = int_to_ptr.hbm [resolvable:$true] %s42_s23 }
   0x4   :  { %s40_s20 = sshll.u32 %s81_s0, 4  ;;  %s41_s20 = int_to_ptr.vmem [resolvable:$true] %s40_s20 }
   0xa   :  { %28 = vperm.xlu0 %53, %v25_v2  }
  0x74   :  { %v21_v3 = vpop.permute.xlu0 %20 }
  0x75   :  { %v23_v6 = vsub.f32 %v15_v4, %v21_v3  ;;  %v24_v7 = vsub.f32 %v16_v5, %v21_v3 }
  0x7c   :  { %v29_v8 = vpop.permute.xlu0 %28 }
  0x7d   :  { %v31_v9 = vmul.f32 %v29_v8, %v23_v6  ;;  %v32_v10 = vmul.f32 %v29_v8, %v24_v7 }
  0x7f   :  { %33 = vst [vmem:[#allocation2] sm:$0x3f] %v31_v9 }
  0x80   :  { %34 = vst [vmem:[#allocation2 + $0x8] sm:$0x3f] %v32_v10 }
  0x81   :  { %45 = dma.vmem_to_hbm [thread:$0]  %s41_s20, 256, %s43_s23, [#allocation3]  }
  0x82   :  { %78 = dma.done.wait [#allocation3], 256  }
  0x83   :  { %79 = vsyncadd [#allocation3], 4294967040 }
  0x84   :  { %50 = vsyncpa [#allocation3], 1 }

</bundles_post_ra>
